<compile_context>
chip_gen: v7x
topology: tpu7x:2x2x1
jax: 0.10.0
libtpu: 0.0.40
codegen_flags: <defaults>
</compile_context>

<pallas_src>
import functools

import jax
import jax.numpy as jnp
import numpy as np
from jax.experimental import pallas as pl
from jax.experimental.pallas import tpu as pltpu

ID_LOSS_WEIGHT = 1.0    # args.id_loss_weight
TEMPERATURE = 0.02      # args.temperature -> logit_scale = 1/temperature (static)
DEFAULT_TILE_C = 4096   # class tile: 4 MiB bf16 weight tile at D=512 (x2 for
                        # double buffering = 8 MiB) -> fits v5e/v6e 32 MiB
                        # scoped VMEM and v7x's 64 MiB physical VMEM; for
                        # C~11-12K the padded c_pad (12288) stays minimal.
NEG_INF = -1e30         # finite "-inf": exp underflows cleanly to 0 in f32
ARG_SENTINEL = 2 ** 30  # > any class id, for first-occurrence argmax ties


def _word4per_loss_kernel(in_ref, tn_ref, fh_ref, w_ref, b_ref, pids_ref,
                          out_ref,
                          m_run, s_run, tgt_run, best_val, best_idx,
                          *, batch, id_loss_weight):
    c = pl.program_id(0)
    last = pl.num_programs(0) - 1
    two_b, tile_c = fh_ref.shape[0], w_ref.shape[1]

    # ------------------------------------------------------------------ #
    # Tile 0: init streaming accumulators (ITC itself is deferred until   #
    # after the ID matmul below so the MXU starts immediately).           #
    # ------------------------------------------------------------------ #
    @pl.when(c == 0)
    def _init():
        m_run[...] = jnp.full_like(m_run, NEG_INF)
        s_run[...] = jnp.zeros_like(s_run)
        tgt_run[...] = jnp.zeros_like(tgt_run)
        best_val[...] = jnp.full_like(best_val, NEG_INF)
        best_idx[...] = jnp.zeros_like(best_idx)

    # ------------------------------------------------------------------ #
    # Streaming ID loss over class tiles: one fused (2B,D)@(D,TILE_C)     #
    # matmul covers image rows [0,B) and text rows [B,2B).  Padded        #
    # classes carry a NEG_INF bias, so no per-tile masking is needed.     #
    # ------------------------------------------------------------------ #
    # TODO(synk): PyTorch runs the classifier in fp16 (.half()); MXU uses bf16.
    # TODO(synk): on v5e/v6e an int8 weight (per-column scales applied to the
    #             f32 logits) would halve the dominant weight-DMA stream; on
    #             v7x the analogous option is fp8 (e4m3).
    logits = jnp.dot(fh_ref[...], w_ref[...],
                     preferred_element_type=jnp.float32) + b_ref[...]
    # (1, TILE_C) lane iota broadcast -- no (2B, TILE_C) int32 temporary.
    cls_ids = c * tile_c + jax.lax.broadcasted_iota(jnp.int32, (1, tile_c), 1)
    pids = pids_ref[...]                                    # (2B, 1) int32

    tile_max = jnp.max(logits, axis=-1, keepdims=True)      # (2B, 1)
    m_new = jnp.maximum(m_run[...], tile_max)
    s_run[...] = (s_run[...] * jnp.exp(m_run[...] - m_new)
                  + jnp.sum(jnp.exp(logits - m_new), axis=-1, keepdims=True))
    m_run[...] = m_new
    tgt_run[...] = tgt_run[...] + jnp.sum(
        jnp.where(cls_ids == pids, logits, 0.0), axis=-1, keepdims=True)

    # running argmax: strict '>' across tiles + min-index within a tile gives
    # first-occurrence semantics (classes streamed in ascending order).
    tile_arg = jnp.min(jnp.where(logits == tile_max, cls_ids,
                                 jnp.int32(ARG_SENTINEL)),
                       axis=-1, keepdims=True)
    better = tile_max > best_val[...]
    best_idx[...] = jnp.where(better, tile_arg, best_idx[...])
    best_val[...] = jnp.where(better, tile_max, best_val[...])

    # ------------------------------------------------------------------ #
    # Tile 0 (after the ID matmul): ITC loss on the resident bf16         #
    # normalized features.  Fills MXU/EUP slack while tile-1 weight DMA   #
    # is in flight.                                                       #
    # ------------------------------------------------------------------ #
    @pl.when(c == 0)
    def _itc():
        nt = (((1,), (1,)), ((), ()))                       # contract last dims
        # logit_scale already folded into in_ref (image side) by the wrapper.
        sim_i2t = jax.lax.dot_general(in_ref[...], tn_ref[...], nt,
                                      preferred_element_type=jnp.float32)
        # transposed similarity recomputed on the MXU instead of XLU-transposing
        sim_t2i = jax.lax.dot_general(tn_ref[...], in_ref[...], nt,
                                      preferred_element_type=jnp.float32)

        row = jax.lax.broadcasted_iota(jnp.int32, (batch, batch), 0)
        col = jax.lax.broadcasted_iota(jnp.int32, (batch, batch), 1)
        diag = (row == col).astype(jnp.float32)

        def _ce_mean(lg):
            m = jnp.max(lg, axis=-1, keepdims=True)
            lse = m + jnp.log(jnp.sum(jnp.exp(lg - m), axis=-1, keepdims=True))
            tgt = jnp.sum(lg * diag, axis=-1, keepdims=True)
            return jnp.mean(lse - tgt)

        out_ref[0] = 0.5 * (_ce_mean(sim_i2t) + _ce_mean(sim_t2i))

    # ------------------------------------------------------------------ #
    # Last tile: finalize ID loss and accuracies.                         #
    # ------------------------------------------------------------------ #
    @pl.when(c == last)
    def _finalize():
        ce = m_run[...] + jnp.log(s_run[...]) - tgt_run[...]       # (2B, 1)
        out_ref[1] = jnp.mean(ce) * id_loss_weight                 # 0.5*(img+txt)
        correct = (best_idx[...] == pids).astype(jnp.float32)      # (2B, 1)
        rows = jax.lax.broadcasted_iota(jnp.int32, (two_b, 1), 0)
        img_mask = (rows < batch).astype(jnp.float32)
        inv_b = 1.0 / float(batch)
        out_ref[2] = jnp.sum(correct * img_mask) * inv_b           # img_acc
        out_ref[3] = jnp.sum(correct * (1.0 - img_mask)) * inv_b   # txt_acc


def prepare_classifier_params(classifier_w, classifier_b, tile_c=DEFAULT_TILE_C):
    """One-time parameter prep (NOT per training step): transpose nn.Linear's
    (C, D) weight to (D, C) bf16, pad C up to a multiple of tile_c, and pad the
    bias with NEG_INF so padded classes are masked by the bias itself."""
    assert tile_c % 128 == 0, "tile_c must be a multiple of 128 lanes"
    num_classes, embed_dim = classifier_w.shape
    c_pad = ((num_classes + tile_c - 1) // tile_c) * tile_c
    w_t = jnp.zeros((embed_dim, c_pad), jnp.bfloat16)
    w_t = w_t.at[:, :num_classes].set(classifier_w.T.astype(jnp.bfloat16))
    b = jnp.full((1, c_pad), NEG_INF, jnp.float32)
    b = b.at[:, :num_classes].set(classifier_b.astype(jnp.float32))
    return w_t, b


def word4per_forward(image_feats, text_feats, caption_ids, pids,
                     classifier_w_t, classifier_b, *, tile_c=DEFAULT_TILE_C):
    """Word4Per.forward() semantics for loss_names='itc+id'.

    image_feats    : (B, L_img, D) f32   -- base_model image tokens (CLS at 0)
    text_feats     : (B, L_txt, D) f32   -- base_model text tokens
    caption_ids    : (B, L_txt)   int32  -- token ids (EOT = argmax position)
    pids           : (B,)         int32
    classifier_w_t : (D, C_pad)  bf16    -- from prepare_classifier_params
    classifier_b   : (1, C_pad)  f32     -- from prepare_classifier_params
    """
    batch = image_feats.shape[0]
    # glue: feature selection exactly as in the PyTorch forward
    i_feats = image_feats[:, 0, :].astype(jnp.float32)
    eot_idx = jnp.argmax(caption_ids, axis=-1)
    t_feats = text_feats[jnp.arange(batch), eot_idx].astype(jnp.float32)

    embed_dim = i_feats.shape[1]
    c_pad = classifier_w_t.shape[1]
    assert c_pad % tile_c == 0
    num_c_tiles = c_pad // tile_c

    logit_scale = float(1.0 / TEMPERATURE)
    # L2-normalize once in f32 (as PyTorch), fold logit_scale into the image
    # side, and hand the kernel only the bf16 operands the ITC matmuls need.
    i_n = (i_feats * (jax.lax.rsqrt(jnp.sum(i_feats * i_feats, axis=-1,
                                            keepdims=True)) * logit_scale)
           ).astype(jnp.bfloat16)
    t_n = (t_feats * jax.lax.rsqrt(jnp.sum(t_feats * t_feats, axis=-1,
                                           keepdims=True))).astype(jnp.bfloat16)

    # fused classifier operand: image rows then text rows (PyTorch: .half())
    feats_half = jnp.concatenate([i_feats, t_feats], axis=0).astype(jnp.bfloat16)
    pids2 = jnp.concatenate([pids, pids], axis=0).reshape(-1, 1).astype(jnp.int32)

    two_b = 2 * batch
    cost = pl.CostEstimate(
        flops=int(2 * two_b * embed_dim * c_pad + 4 * batch * batch * embed_dim),
        transcendentals=int(two_b * c_pad + 2 * batch * batch),
        bytes_accessed=int(2 * embed_dim * c_pad + 4 * c_pad
                           + 2 * (two_b + 2 * batch) * embed_dim
                           + 4 * two_b + 16))

    kernel = functools.partial(
        _word4per_loss_kernel,
        batch=batch, id_loss_weight=float(ID_LOSS_WEIGHT))

    # TODO(synk): grid-invariant inputs (i_n / t_n / feats_half / pids2) could
    #             be single-buffered via pipeline_mode=pl.Buffered(1) to free
    #             VMEM headroom on v7x (64 MiB physical).
    # TODO(synk): on v7x (2 TensorCores) split the class axis as
    #             grid=(2, num_c_tiles//2) with ("parallel","arbitrary"),
    #             per-half accumulator outputs and a tiny wrapper merge.
    out = pl.pallas_call(
        kernel,
        out_shape=jax.ShapeDtypeStruct((4,), jnp.float32),
        grid_spec=pltpu.PrefetchScalarGridSpec(
            num_scalar_prefetch=0,
            grid=(num_c_tiles,),
            in_specs=[
                pl.BlockSpec((batch, embed_dim), lambda c: (0, 0)),   # i_n bf16 (scaled)
                pl.BlockSpec((batch, embed_dim), lambda c: (0, 0)),   # t_n bf16
                pl.BlockSpec((two_b, embed_dim), lambda c: (0, 0)),   # stacked bf16 feats
                pl.BlockSpec((embed_dim, tile_c), lambda c: (0, c)),  # weight tile
                pl.BlockSpec((1, tile_c), lambda c: (0, c)),          # bias tile (NEG_INF pad)
                pl.BlockSpec((two_b, 1), lambda c: (0, 0)),           # pids (img+txt)
            ],
            out_specs=pl.BlockSpec(memory_space=pltpu.MemorySpace.SMEM),
            scratch_shapes=[
                pltpu.VMEM((two_b, 1), jnp.float32),  # running max
                pltpu.VMEM((two_b, 1), jnp.float32),  # running sum-exp
                pltpu.VMEM((two_b, 1), jnp.float32),  # target logit
                pltpu.VMEM((two_b, 1), jnp.float32),  # argmax running value
                pltpu.VMEM((two_b, 1), jnp.int32),    # argmax running index
            ]),
        # C axis carries streaming accumulators -> "arbitrary".
        compiler_params=pltpu.CompilerParams(
            dimension_semantics=("arbitrary",),
            vmem_limit_bytes=32 * 1024 * 1024),
        cost_estimate=cost,
    )(i_n, t_n, feats_half, classifier_w_t, classifier_b, pids2)

    return {
        "temperature": jnp.float32(TEMPERATURE),   # 1 / logit_scale
        "itc_loss": out[0],
        "id_loss": out[1],
        "img_acc": out[2],
        "txt_acc": out[3],
    }
    # TODO(synk): 'sdm', 'cmpm', 'mlm' losses and the CLIP backbone itself are
    # not part of the configured 'itc+id' task set and are not implemented here.


def _reference(image_feats, text_feats, caption_ids, pids, classifier_w,
               classifier_b):
    """Pure-JAX reference of the same loss head (for a light sanity check)."""
    batch = image_feats.shape[0]
    i_feats = image_feats[:, 0, :].astype(jnp.float32)
    eot_idx = jnp.argmax(caption_ids, axis=-1)
    t_feats = text_feats[jnp.arange(batch), eot_idx].astype(jnp.float32)

    def ce(lg, lb):
        lse = jax.scipy.special.logsumexp(lg, axis=-1)
        tgt = jnp.take_along_axis(lg, lb[:, None], axis=-1)[:, 0]
        return jnp.mean(lse - tgt)

    scale = 1.0 / TEMPERATURE
    i_n = i_feats / jnp.linalg.norm(i_feats, axis=-1, keepdims=True)
    t_n = t_feats / jnp.linalg.norm(t_feats, axis=-1, keepdims=True)
    sim = scale * jnp.dot(i_n, t_n.T, precision=jax.lax.Precision.HIGHEST)
    labels = jnp.arange(batch)
    itc = 0.5 * (ce(sim, labels) + ce(sim.T, labels))

    w = classifier_w.astype(jnp.bfloat16)
    il = jnp.dot(i_feats.astype(jnp.bfloat16), w.T,
                 preferred_element_type=jnp.float32) + classifier_b
    tl = jnp.dot(t_feats.astype(jnp.bfloat16), w.T,
                 preferred_element_type=jnp.float32) + classifier_b
    idl = 0.5 * (ce(il, pids) + ce(tl, pids)) * ID_LOSS_WEIGHT
    iacc = jnp.mean((jnp.argmax(il, axis=-1) == pids).astype(jnp.float32))
    tacc = jnp.mean((jnp.argmax(tl, axis=-1) == pids).astype(jnp.float32))
    return itc, idl, iacc, tacc


if __name__ == "__main__":
    key = jax.random.PRNGKey(0)
    # small demo shapes: D lane-dense (multiple of 128); C=200 is padded to 256
    # so the NEG_INF-bias padded-class masking and the 2-tile class grid are
    # both exercised.
    B, L_IMG, L_TXT, D, C = 8, 5, 8, 128, 200
    TILE_C = 128

    k1, k2, k3, k4, k5 = jax.random.split(key, 5)
    image_feats = jax.random.normal(k1, (B, L_IMG, D), jnp.float32)
    text_feats = jax.random.normal(k2, (B, L_TXT, D), jnp.float32)
    caption_ids = jax.random.randint(k3, (B, L_TXT), 0, 1000, jnp.int32)
    pids = jax.random.randint(k4, (B,), 0, C, jnp.int32)

    # classifier init: nn.init.normal_(std=0.001), bias = 0
    classifier_w = 0.001 * jax.random.normal(k5, (C, D), jnp.float32)
    classifier_b = jnp.zeros((C,), jnp.float32)

    # one-time prep: cached (D, C_pad) bf16 weight + NEG_INF-padded bias
    w_t, b_pad = prepare_classifier_params(classifier_w, classifier_b,
                                           tile_c=TILE_C)

    fwd = jax.jit(functools.partial(word4per_forward, tile_c=TILE_C))
    ret = fwd(image_feats, text_feats, caption_ids, pids, w_t, b_pad)
    jax.block_until_ready(ret)

    # light correctness check against the pure-JAX reference
    itc_r, id_r, iacc_r, tacc_r = _reference(image_feats, text_feats,
                                             caption_ids, pids,
                                             classifier_w, classifier_b)
    np.testing.assert_allclose(float(ret["itc_loss"]), float(itc_r),
                               rtol=5e-2, atol=2e-2)
    np.testing.assert_allclose(float(ret["id_loss"]), float(id_r),
                               rtol=5e-2, atol=2e-2)
    np.testing.assert_allclose(float(ret["img_acc"]), float(iacc_r), atol=0.13)
    np.testing.assert_allclose(float(ret["txt_acc"]), float(tacc_r), atol=0.13)

    print("KERNEL_OK")
</pallas_src>

<mosaic_0001>
module attributes {stable_mosaic.version = 11 : i64} {
  func.func @_word4per_loss_kernel(%arg0: i32, %arg1: memref<8x128xbf16, #tpu.memory_space<vmem>>, %arg2: memref<8x128xbf16, #tpu.memory_space<vmem>>, %arg3: memref<16x128xbf16, #tpu.memory_space<vmem>>, %arg4: memref<128x128xbf16, #tpu.memory_space<vmem>>, %arg5: memref<1x128xf32, #tpu.memory_space<vmem>>, %arg6: memref<16x1xi32, #tpu.memory_space<vmem>>, %arg7: memref<4xf32, #tpu.memory_space<smem>>, %arg8: memref<16x1xf32, #tpu.memory_space<vmem>>, %arg9: memref<16x1xf32, #tpu.memory_space<vmem>>, %arg10: memref<16x1xf32, #tpu.memory_space<vmem>>, %arg11: memref<16x1xf32, #tpu.memory_space<vmem>>, %arg12: memref<16x1xi32, #tpu.memory_space<vmem>>) attributes {dimension_semantics = [#tpu.dimension_semantics<arbitrary>], iteration_bounds = array<i64: 2>, scalar_prefetch = 0 : i64, scratch_operands = 5 : i64, tpu.core_type = #tpu.core_type<tc>, window_params = [{pipeline_mode = #tpu.pipeline_mode<synchronous>, transform_indices = @transform_0, window_bounds = array<i64: 8, 128>}, {pipeline_mode = #tpu.pipeline_mode<synchronous>, transform_indices = @transform_1, window_bounds = array<i64: 8, 128>}, {pipeline_mode = #tpu.pipeline_mode<synchronous>, transform_indices = @transform_2, window_bounds = array<i64: 16, 128>}, {transform_indices = @transform_3, window_bounds = array<i64: 128, 128>}, {transform_indices = @transform_4, window_bounds = array<i64: 1, 128>}, {pipeline_mode = #tpu.pipeline_mode<synchronous>, transform_indices = @transform_5, window_bounds = array<i64: 16, 1>}, {transform_indices = @transform_6, window_bounds = array<i64: 4>}]} {
    %c0_i32 = arith.constant 0 : i32
    %0 = arith.cmpi eq, %arg0, %c0_i32 : i32
    %1 = arith.extui %0 : i1 to i32
    %c0_i32_0 = arith.constant 0 : i32
    %2 = arith.cmpi ne, %1, %c0_i32_0 : i32
    scf.if %2 {
      %cst_40 = arith.constant -1.000000e+30 : f32
      %63 = vector.broadcast %cst_40 : f32 to vector<16x1xf32>
      %c0_41 = arith.constant 0 : index
      %c0_42 = arith.constant 0 : index
      %64 = vector.load %arg8[%c0_41, %c0_42] : memref<16x1xf32, #tpu.memory_space<vmem>>, vector<16x1xf32>
      tpu.vector_store %arg8[%c0_41, %c0_42], %63 {strides = array<i32>} : memref<16x1xf32, #tpu.memory_space<vmem>>, vector<16x1xf32>,
      %cst_43 = arith.constant 0.000000e+00 : f32
      %65 = vector.broadcast %cst_43 : f32 to vector<16x1xf32>
      %c0_44 = arith.constant 0 : index
      %c0_45 = arith.constant 0 : index
      %66 = vector.load %arg9[%c0_44, %c0_45] : memref<16x1xf32, #tpu.memory_space<vmem>>, vector<16x1xf32>
      tpu.vector_store %arg9[%c0_44, %c0_45], %65 {strides = array<i32>} : memref<16x1xf32, #tpu.memory_space<vmem>>, vector<16x1xf32>,
      %cst_46 = arith.constant 0.000000e+00 : f32
      %67 = vector.broadcast %cst_46 : f32 to vector<16x1xf32>
      %c0_47 = arith.constant 0 : index
      %c0_48 = arith.constant 0 : index
      %68 = vector.load %arg10[%c0_47, %c0_48] : memref<16x1xf32, #tpu.memory_space<vmem>>, vector<16x1xf32>
      tpu.vector_store %arg10[%c0_47, %c0_48], %67 {strides = array<i32>} : memref<16x1xf32, #tpu.memory_space<vmem>>, vector<16x1xf32>,
      %cst_49 = arith.constant -1.000000e+30 : f32
      %69 = vector.broadcast %cst_49 : f32 to vector<16x1xf32>
      %c0_50 = arith.constant 0 : index
      %c0_51 = arith.constant 0 : index
      %70 = vector.load %arg11[%c0_50, %c0_51] : memref<16x1xf32, #tpu.memory_space<vmem>>, vector<16x1xf32>
      tpu.vector_store %arg11[%c0_50, %c0_51], %69 {strides = array<i32>} : memref<16x1xf32, #tpu.memory_space<vmem>>, vector<16x1xf32>,
      %c0_i32_52 = arith.constant 0 : i32
      %71 = vector.broadcast %c0_i32_52 : i32 to vector<16x1xi32>
      %c0_53 = arith.constant 0 : index
      %c0_54 = arith.constant 0 : index
      %72 = vector.load %arg12[%c0_53, %c0_54] : memref<16x1xi32, #tpu.memory_space<vmem>>, vector<16x1xi32>
      tpu.vector_store %arg12[%c0_53, %c0_54], %71 {strides = array<i32>} : memref<16x1xi32, #tpu.memory_space<vmem>>, vector<16x1xi32>,
    } else {
    }
    %c0 = arith.constant 0 : index
    %c0_1 = arith.constant 0 : index
    %3 = vector.load %arg3[%c0, %c0_1] : memref<16x128xbf16, #tpu.memory_space<vmem>>, vector<16x128xbf16>
    %c0_2 = arith.constant 0 : index
    %c0_3 = arith.constant 0 : index
    %4 = vector.load %arg4[%c0_2, %c0_3] : memref<128x128xbf16, #tpu.memory_space<vmem>>, vector<128x128xbf16>
    %cst = arith.constant dense<0.000000e+00> : vector<16x128xf32>
    %5 = tpu.matmul %3, %4, %cst {dimension_numbers = #tpu.dot_dimension_numbers<[1], [0], [0], [1], [0, 0, 1, 1], [], []>} : vector<16x128xbf16>, vector<128x128xbf16>, vector<16x128xf32> -> vector<16x128xf32>
    %c0_4 = arith.constant 0 : index
    %c0_5 = arith.constant 0 : index
    %6 = vector.load %arg5[%c0_4, %c0_5] : memref<1x128xf32, #tpu.memory_space<vmem>>, vector<1x128xf32>
    %7 = vector.broadcast %6 : vector<1x128xf32> to vector<16x128xf32>
    %8 = arith.addf %5, %7 : vector<16x128xf32>
    %c128_i32 = arith.constant 128 : i32
    %9 = arith.muli %arg0, %c128_i32 : i32
    %10 = tpu.iota {dimensions = array<i32: 1>} : vector<1x128xi32>
    %11 = vector.broadcast %9 : i32 to vector<1x128xi32>
    %12 = arith.addi %11, %10 : vector<1x128xi32>
    %c0_6 = arith.constant 0 : index
    %c0_7 = arith.constant 0 : index
    %13 = vector.load %arg6[%c0_6, %c0_7] : memref<16x1xi32, #tpu.memory_space<vmem>>, vector<16x1xi32>
    %cst_8 = arith.constant dense<0xFF800000> : vector<16xf32>
    %14 = vector.multi_reduction <maximumf>, %8, %cst_8 [1] : vector<16x128xf32> to vector<16xf32>
    %15 = vector.shape_cast %14 : vector<16xf32> to vector<16x1xf32>
    %c0_9 = arith.constant 0 : index
    %c0_10 = arith.constant 0 : index
    %16 = vector.load %arg8[%c0_9, %c0_10] : memref<16x1xf32, #tpu.memory_space<vmem>>, vector<16x1xf32>
    %17 = arith.maximumf %16, %15 : vector<16x1xf32>
    %c0_11 = arith.constant 0 : index
    %c0_12 = arith.constant 0 : index
    %18 = vector.load %arg9[%c0_11, %c0_12] : memref<16x1xf32, #tpu.memory_space<vmem>>, vector<16x1xf32>
    %c0_13 = arith.constant 0 : index
    %c0_14 = arith.constant 0 : index
    %19 = vector.load %arg8[%c0_13, %c0_14] : memref<16x1xf32, #tpu.memory_space<vmem>>, vector<16x1xf32>
    %20 = arith.subf %19, %17 : vector<16x1xf32>
    %21 = math.exp %20 : vector<16x1xf32>
    %22 = arith.mulf %18, %21 : vector<16x1xf32>
    %23 = vector.broadcast %17 : vector<16x1xf32> to vector<16x128xf32>
    %24 = arith.subf %8, %23 : vector<16x128xf32>
    %25 = math.exp %24 : vector<16x128xf32>
    %cst_15 = arith.constant dense<0.000000e+00> : vector<16xf32>
    %26 = vector.multi_reduction <add>, %25, %cst_15 [1] : vector<16x128xf32> to vector<16xf32>
    %27 = vector.shape_cast %26 : vector<16xf32> to vector<16x1xf32>
    %28 = arith.addf %22, %27 : vector<16x1xf32>
    %c0_16 = arith.constant 0 : index
    %c0_17 = arith.constant 0 : index
    %29 = vector.load %arg9[%c0_16, %c0_17] : memref<16x1xf32, #tpu.memory_space<vmem>>, vector<16x1xf32>
    tpu.vector_store %arg9[%c0_16, %c0_17], %28 {strides = array<i32>} : memref<16x1xf32, #tpu.memory_space<vmem>>, vector<16x1xf32>,
    %c0_18 = arith.constant 0 : index
    %c0_19 = arith.constant 0 : index
    %30 = vector.load %arg8[%c0_18, %c0_19] : memref<16x1xf32, #tpu.memory_space<vmem>>, vector<16x1xf32>
    tpu.vector_store %arg8[%c0_18, %c0_19], %17 {strides = array<i32>} : memref<16x1xf32, #tpu.memory_space<vmem>>, vector<16x1xf32>,
    %c0_20 = arith.constant 0 : index
    %c0_21 = arith.constant 0 : index
    %31 = vector.load %arg10[%c0_20, %c0_21] : memref<16x1xf32, #tpu.memory_space<vmem>>, vector<16x1xf32>
    %32 = vector.broadcast %12 : vector<1x128xi32> to vector<16x128xi32>
    %33 = vector.broadcast %13 : vector<16x1xi32> to vector<16x128xi32>
    %34 = arith.cmpi eq, %32, %33 : vector<16x128xi32>
    %cst_22 = arith.constant 0.000000e+00 : f32
    %35 = vector.broadcast %cst_22 : f32 to vector<16x128xf32>
    %36 = arith.select %34, %8, %35 : vector<16x128xi1>, vector<16x128xf32>
    %cst_23 = arith.constant dense<0.000000e+00> : vector<16xf32>
    %37 = vector.multi_reduction <add>, %36, %cst_23 [1] : vector<16x128xf32> to vector<16xf32>
    %38 = vector.shape_cast %37 : vector<16xf32> to vector<16x1xf32>
    %39 = arith.addf %31, %38 : vector<16x1xf32>
    %c0_24 = arith.constant 0 : index
    %c0_25 = arith.constant 0 : index
    %40 = vector.load %arg10[%c0_24, %c0_25] : memref<16x1xf32, #tpu.memory_space<vmem>>, vector<16x1xf32>
    tpu.vector_store %arg10[%c0_24, %c0_25], %39 {strides = array<i32>} : memref<16x1xf32, #tpu.memory_space<vmem>>, vector<16x1xf32>,
    %41 = vector.broadcast %15 : vector<16x1xf32> to vector<16x128xf32>
    %42 = arith.cmpf oeq, %8, %41 : vector<16x128xf32>
    %c1073741824_i32 = arith.constant 1073741824 : i32
    %43 = vector.shape_cast %12 : vector<1x128xi32> to vector<1x128xi32>
    %44 = vector.broadcast %43 : vector<1x128xi32> to vector<16x128xi32>
    %45 = vector.broadcast %c1073741824_i32 : i32 to vector<16x128xi32>
    %46 = arith.select %42, %44, %45 : vector<16x128xi1>, vector<16x128xi32>
    %cst_26 = arith.constant dense<2147483647> : vector<16xi32>
    %47 = vector.multi_reduction <minsi>, %46, %cst_26 [1] : vector<16x128xi32> to vector<16xi32>
    %48 = vector.shape_cast %47 : vector<16xi32> to vector<16x1xi32>
    %c0_27 = arith.constant 0 : index
    %c0_28 = arith.constant 0 : index
    %49 = vector.load %arg11[%c0_27, %c0_28] : memref<16x1xf32, #tpu.memory_space<vmem>>, vector<16x1xf32>
    %50 = arith.cmpf ogt, %15, %49 : vector<16x1xf32>
    %c0_29 = arith.constant 0 : index
    %c0_30 = arith.constant 0 : index
    %51 = vector.load %arg12[%c0_29, %c0_30] : memref<16x1xi32, #tpu.memory_space<vmem>>, vector<16x1xi32>
    %52 = arith.select %50, %48, %51 : vector<16x1xi1>, vector<16x1xi32>
    %c0_31 = arith.constant 0 : index
    %c0_32 = arith.constant 0 : index
    %53 = vector.load %arg12[%c0_31, %c0_32] : memref<16x1xi32, #tpu.memory_space<vmem>>, vector<16x1xi32>
    tpu.vector_store %arg12[%c0_31, %c0_32], %52 {strides = array<i32>} : memref<16x1xi32, #tpu.memory_space<vmem>>, vector<16x1xi32>,
    %c0_33 = arith.constant 0 : index
    %c0_34 = arith.constant 0 : index
    %54 = vector.load %arg11[%c0_33, %c0_34] : memref<16x1xf32, #tpu.memory_space<vmem>>, vector<16x1xf32>
    %55 = arith.select %50, %15, %54 : vector<16x1xi1>, vector<16x1xf32>
    %c0_35 = arith.constant 0 : index
    %c0_36 = arith.constant 0 : index
    %56 = vector.load %arg11[%c0_35, %c0_36] : memref<16x1xf32, #tpu.memory_space<vmem>>, vector<16x1xf32>
    tpu.vector_store %arg11[%c0_35, %c0_36], %55 {strides = array<i32>} : memref<16x1xf32, #tpu.memory_space<vmem>>, vector<16x1xf32>,
    %c0_i32_37 = arith.constant 0 : i32
    %57 = arith.cmpi eq, %arg0, %c0_i32_37 : i32
    %58 = arith.extui %57 : i1 to i32
    %c0_i32_38 = arith.constant 0 : i32
    %59 = arith.cmpi ne, %58, %c0_i32_38 : i32
    scf.if %59 {
      %c0_40 = arith.constant 0 : index
      %c0_41 = arith.constant 0 : index
      %63 = vector.load %arg1[%c0_40, %c0_41] : memref<8x128xbf16, #tpu.memory_space<vmem>>, vector<8x128xbf16>
      %c0_42 = arith.constant 0 : index
      %c0_43 = arith.constant 0 : index
      %64 = vector.load %arg2[%c0_42, %c0_43] : memref<8x128xbf16, #tpu.memory_space<vmem>>, vector<8x128xbf16>
      %cst_44 = arith.constant dense<0.000000e+00> : vector<8x8xf32>
      %65 = tpu.matmul %63, %64, %cst_44 {dimension_numbers = #tpu.dot_dimension_numbers<[1], [1], [0], [0], [0, 0, 1, 0], [], []>} : vector<8x128xbf16>, vector<8x128xbf16>, vector<8x8xf32> -> vector<8x8xf32>
      %c0_45 = arith.constant 0 : index
      %c0_46 = arith.constant 0 : index
      %66 = vector.load %arg2[%c0_45, %c0_46] : memref<8x128xbf16, #tpu.memory_space<vmem>>, vector<8x128xbf16>
      %c0_47 = arith.constant 0 : index
      %c0_48 = arith.constant 0 : index
      %67 = vector.load %arg1[%c0_47, %c0_48] : memref<8x128xbf16, #tpu.memory_space<vmem>>, vector<8x128xbf16>
      %cst_49 = arith.constant dense<0.000000e+00> : vector<8x8xf32>
      %68 = tpu.matmul %66, %67, %cst_49 {dimension_numbers = #tpu.dot_dimension_numbers<[1], [1], [0], [0], [0, 0, 1, 0], [], []>} : vector<8x128xbf16>, vector<8x128xbf16>, vector<8x8xf32> -> vector<8x8xf32>
      %69 = tpu.iota {dimensions = array<i32: 0>} : vector<8x8xi32>
      %70 = tpu.iota {dimensions = array<i32: 1>} : vector<8x8xi32>
      %71 = arith.cmpi eq, %69, %70 : vector<8x8xi32>
      %72 = arith.extui %71 : vector<8x8xi1> to vector<8x8xi32>
      %73 = arith.sitofp %72 : vector<8x8xi32> to vector<8x8xf32>
      %cst_50 = arith.constant dense<0xFF800000> : vector<8xf32>
      %74 = vector.multi_reduction <maximumf>, %65, %cst_50 [1] : vector<8x8xf32> to vector<8xf32>
      %75 = vector.shape_cast %74 : vector<8xf32> to vector<8x1xf32>
      %76 = vector.broadcast %75 : vector<8x1xf32> to vector<8x8xf32>
      %77 = arith.subf %65, %76 : vector<8x8xf32>
      %78 = math.exp %77 : vector<8x8xf32>
      %cst_51 = arith.constant dense<0.000000e+00> : vector<8xf32>
      %79 = vector.multi_reduction <add>, %78, %cst_51 [1] : vector<8x8xf32> to vector<8xf32>
      %80 = vector.shape_cast %79 : vector<8xf32> to vector<8x1xf32>
      %81 = math.log %80 : vector<8x1xf32>
      %82 = arith.addf %75, %81 : vector<8x1xf32>
      %83 = arith.mulf %65, %73 : vector<8x8xf32>
      %cst_52 = arith.constant dense<0.000000e+00> : vector<8xf32>
      %84 = vector.multi_reduction <add>, %83, %cst_52 [1] : vector<8x8xf32> to vector<8xf32>
      %85 = vector.shape_cast %84 : vector<8xf32> to vector<8x1xf32>
      %86 = arith.subf %82, %85 : vector<8x1xf32>
      %87 = vector.shape_cast %86 : vector<8x1xf32> to vector<1x8x1xf32>
      %cst_53 = arith.constant dense<0.000000e+00> : vector<1xf32>
      %88 = vector.multi_reduction <add>, %87, %cst_53 [1, 2] : vector<1x8x1xf32> to vector<1xf32>
      %89 = vector.shape_cast %88 : vector<1xf32> to vector<1x1x1xf32>
      %90 = vector.extract %89[0, 0, 0] : f32 from vector<1x1x1xf32>
      %cst_54 = arith.constant 8.000000e+00 : f32
      %91 = arith.divf %90, %cst_54 : f32
      %cst_55 = arith.constant dense<0xFF800000> : vector<8xf32>
      %92 = vector.multi_reduction <maximumf>, %68, %cst_55 [1] : vector<8x8xf32> to vector<8xf32>
      %93 = vector.shape_cast %92 : vector<8xf32> to vector<8x1xf32>
      %94 = vector.broadcast %93 : vector<8x1xf32> to vector<8x8xf32>
      %95 = arith.subf %68, %94 : vector<8x8xf32>
      %96 = math.exp %95 : vector<8x8xf32>
      %cst_56 = arith.constant dense<0.000000e+00> : vector<8xf32>
      %97 = vector.multi_reduction <add>, %96, %cst_56 [1] : vector<8x8xf32> to vector<8xf32>
      %98 = vector.shape_cast %97 : vector<8xf32> to vector<8x1xf32>
      %99 = math.log %98 : vector<8x1xf32>
      %100 = arith.addf %93, %99 : vector<8x1xf32>
      %101 = arith.mulf %68, %73 : vector<8x8xf32>
      %cst_57 = arith.constant dense<0.000000e+00> : vector<8xf32>
      %102 = vector.multi_reduction <add>, %101, %cst_57 [1] : vector<8x8xf32> to vector<8xf32>
      %103 = vector.shape_cast %102 : vector<8xf32> to vector<8x1xf32>
      %104 = arith.subf %100, %103 : vector<8x1xf32>
      %105 = vector.shape_cast %104 : vector<8x1xf32> to vector<1x8x1xf32>
      %cst_58 = arith.constant dense<0.000000e+00> : vector<1xf32>
      %106 = vector.multi_reduction <add>, %105, %cst_58 [1, 2] : vector<1x8x1xf32> to vector<1xf32>
      %107 = vector.shape_cast %106 : vector<1xf32> to vector<1x1x1xf32>
      %108 = vector.extract %107[0, 0, 0] : f32 from vector<1x1x1xf32>
      %cst_59 = arith.constant 8.000000e+00 : f32
      %109 = arith.divf %108, %cst_59 : f32
      %110 = arith.addf %91, %109 : f32
      %cst_60 = arith.constant 5.000000e-01 : f32
      %111 = arith.mulf %cst_60, %110 : f32
      %c0_61 = arith.constant 0 : index
      %112 = memref.load %arg7[%c0_61] : memref<4xf32, #tpu.memory_space<smem>>
      memref.store %111, %arg7[%c0_61] : memref<4xf32, #tpu.memory_space<smem>>
    } else {
    }
    %c1_i32 = arith.constant 1 : i32
    %60 = arith.cmpi eq, %arg0, %c1_i32 : i32
    %61 = arith.extui %60 : i1 to i32
    %c0_i32_39 = arith.constant 0 : i32
    %62 = arith.cmpi ne, %61, %c0_i32_39 : i32
    scf.if %62 {
      %c0_40 = arith.constant 0 : index
      %c0_41 = arith.constant 0 : index
      %63 = vector.load %arg8[%c0_40, %c0_41] : memref<16x1xf32, #tpu.memory_space<vmem>>, vector<16x1xf32>
      %c0_42 = arith.constant 0 : index
      %c0_43 = arith.constant 0 : index
      %64 = vector.load %arg9[%c0_42, %c0_43] : memref<16x1xf32, #tpu.memory_space<vmem>>, vector<16x1xf32>
      %65 = math.log %64 : vector<16x1xf32>
      %66 = arith.addf %63, %65 : vector<16x1xf32>
      %c0_44 = arith.constant 0 : index
      %c0_45 = arith.constant 0 : index
      %67 = vector.load %arg10[%c0_44, %c0_45] : memref<16x1xf32, #tpu.memory_space<vmem>>, vector<16x1xf32>
      %68 = arith.subf %66, %67 : vector<16x1xf32>
      %69 = vector.shape_cast %68 : vector<16x1xf32> to vector<1x16x1xf32>
      %cst_46 = arith.constant dense<0.000000e+00> : vector<1xf32>
      %70 = vector.multi_reduction <add>, %69, %cst_46 [1, 2] : vector<1x16x1xf32> to vector<1xf32>
      %71 = vector.shape_cast %70 : vector<1xf32> to vector<1x1x1xf32>
      %72 = vector.extract %71[0, 0, 0] : f32 from vector<1x1x1xf32>
      %cst_47 = arith.constant 1.600000e+01 : f32
      %73 = arith.divf %72, %cst_47 : f32
      %cst_48 = arith.constant 1.000000e+00 : f32
      %74 = arith.mulf %73, %cst_48 : f32
      %c1 = arith.constant 1 : index
      %75 = memref.load %arg7[%c1] : memref<4xf32, #tpu.memory_space<smem>>
      memref.store %74, %arg7[%c1] : memref<4xf32, #tpu.memory_space<smem>>
      %c0_49 = arith.constant 0 : index
      %c0_50 = arith.constant 0 : index
      %76 = vector.load %arg12[%c0_49, %c0_50] : memref<16x1xi32, #tpu.memory_space<vmem>>, vector<16x1xi32>
      %77 = arith.cmpi eq, %76, %13 : vector<16x1xi32>
      %78 = arith.extui %77 : vector<16x1xi1> to vector<16x1xi32>
      %79 = arith.sitofp %78 : vector<16x1xi32> to vector<16x1xf32>
      %80 = tpu.iota {dimensions = array<i32: 0>} : vector<16x1xi32>
      %c8_i32 = arith.constant 8 : i32
      %81 = vector.broadcast %c8_i32 : i32 to vector<16x1xi32>
      %82 = arith.cmpi slt, %80, %81 : vector<16x1xi32>
      %83 = arith.extui %82 : vector<16x1xi1> to vector<16x1xi32>
      %84 = arith.sitofp %83 : vector<16x1xi32> to vector<16x1xf32>
      %85 = arith.mulf %79, %84 : vector<16x1xf32>
      %86 = vector.shape_cast %85 : vector<16x1xf32> to vector<1x16x1xf32>
      %cst_51 = arith.constant dense<0.000000e+00> : vector<1xf32>
      %87 = vector.multi_reduction <add>, %86, %cst_51 [1, 2] : vector<1x16x1xf32> to vector<1xf32>
      %88 = vector.shape_cast %87 : vector<1xf32> to vector<1x1x1xf32>
      %89 = vector.extract %88[0, 0, 0] : f32 from vector<1x1x1xf32>
      %cst_52 = arith.constant 1.250000e-01 : f32
      %90 = arith.mulf %89, %cst_52 : f32
      %c2 = arith.constant 2 : index
      %91 = memref.load %arg7[%c2] : memref<4xf32, #tpu.memory_space<smem>>
      memref.store %90, %arg7[%c2] : memref<4xf32, #tpu.memory_space<smem>>
      %cst_53 = arith.constant 1.000000e+00 : f32
      %92 = vector.broadcast %cst_53 : f32 to vector<16x1xf32>
      %93 = arith.subf %92, %84 : vector<16x1xf32>
      %94 = arith.mulf %79, %93 : vector<16x1xf32>
      %95 = vector.shape_cast %94 : vector<16x1xf32> to vector<1x16x1xf32>
      %cst_54 = arith.constant dense<0.000000e+00> : vector<1xf32>
      %96 = vector.multi_reduction <add>, %95, %cst_54 [1, 2] : vector<1x16x1xf32> to vector<1xf32>
      %97 = vector.shape_cast %96 : vector<1xf32> to vector<1x1x1xf32>
      %98 = vector.extract %97[0, 0, 0] : f32 from vector<1x1x1xf32>
      %cst_55 = arith.constant 1.250000e-01 : f32
      %99 = arith.mulf %98, %cst_55 : f32
      %c3 = arith.constant 3 : index
      %100 = memref.load %arg7[%c3] : memref<4xf32, #tpu.memory_space<smem>>
      memref.store %99, %arg7[%c3] : memref<4xf32, #tpu.memory_space<smem>>
    } else {
    }
    return
  }
  func.func @transform_0(%arg0: i32) -> (i32, i32) {
    %c0_i32 = arith.constant 0 : i32
    %c0_i32_0 = arith.constant 0 : i32
    %c0_i32_1 = arith.constant 0 : i32
    return %c0_i32, %c0_i32_0 : i32, i32
  }
  func.func @transform_1(%arg0: i32) -> (i32, i32) {
    %c0_i32 = arith.constant 0 : i32
    %c0_i32_0 = arith.constant 0 : i32
    %c0_i32_1 = arith.constant 0 : i32
    return %c0_i32, %c0_i32_0 : i32, i32
  }
  func.func @transform_2(%arg0: i32) -> (i32, i32) {
    %c0_i32 = arith.constant 0 : i32
    %c0_i32_0 = arith.constant 0 : i32
    %c0_i32_1 = arith.constant 0 : i32
    return %c0_i32, %c0_i32_0 : i32, i32
  }
  func.func @transform_3(%arg0: i32) -> (i32, i32) {
    %c0_i32 = arith.constant 0 : i32
    %c0_i32_0 = arith.constant 0 : i32
    return %c0_i32, %arg0 : i32, i32
  }
  func.func @transform_4(%arg0: i32) -> (i32, i32) {
    %c0_i32 = arith.constant 0 : i32
    %c0_i32_0 = arith.constant 0 : i32
    return %c0_i32, %arg0 : i32, i32
  }
  func.func @transform_5(%arg0: i32) -> (i32, i32) {
    %c0_i32 = arith.constant 0 : i32
    %c0_i32_0 = arith.constant 0 : i32
    %c0_i32_1 = arith.constant 0 : i32
    return %c0_i32, %c0_i32_0 : i32, i32
  }
  func.func @transform_6(%arg0: i32) -> i32 {
    %c0_i32 = arith.constant 0 : i32
    %c0_i32_0 = arith.constant 0 : i32
    return %c0_i32 : i32
  }
}

</mosaic_0001>

<bundles_post_ra>
// kernel: word4per_forward.1
= control target key start
LH: loop header
LB: loop body
LE: loop exit
PB: predicated region body
PF: predicated region fallthrough
CT: control target
= control target key end

     0   :  { %11 = vsyncpa [#allocation9], 0  ;;  %s1155_s21 = smov 0   ;;  %s1157_s22 = smov 0   ;;  %s1371_s0 = inlined_call_operand.vmem [shape: bf16[8,128], index: 0, kind: input, shape index: {}]   ;;  %s1372_s1 = inlined_call_operand.vmem [shape: bf16[8,128], index: 1, kind: input, shape index: {}]   ;;  %s1373_s2 = inlined_call_operand.vmem [shape: bf16[16,128], index: 2, kind: input, shape index: {}]   ;;  %s1374_s3 = inlined_call_operand.vmem [shape: bf16[128,256], index: 3, kind: input, shape index: {}]   ;;  %s1375_s4 = inlined_call_operand.vmem [shape: f32[1,256], index: 4, kind: input, shape index: {}]   ;;  %s1376_s5 = inlined_call_operand.vmem [shape: s32[16,1], index: 5, kind: input, shape index: {}]   ;;  %s1377_s6 = inlined_call_operand.vmem [shape: f32[4], index: 6, kind: output, shape index: {}]  }
   0x1   :  { %s1159_s23 = smov 0  }
   0x2 LB: > { %s1171_s24 = sadd.s32 4294967295, %s1108_s23   ;;  %s1174_s25 = sadd.s32 1, %s1108_s23   ;;  %s1108_s23 = sphi %s1159_s23, %s1380_s23   ;;  %s1104_s22 = sphi %s1157_s22, %s1379_s22   ;;  %s1100_s21 = sphi %s1155_s21, %s1378_s21  }
   0x3   : > { %s84_s26 = ssub.s32 %s1108_s23, %s1174_s25  ;;  %s87_s27 = sadd.s32 1, %s1104_s22 }
   0x4   : > { %p85_p0 = scmp.eq.s32.totalorder %s84_s26, 0  ;;  %p94_p1 = scmp.ne.s32.totalorder %s1104_s22, %s1100_s21 }
   0x5   : > { %p95_p2 = scmp.eq.s32.totalorder %s1108_s23, 0  ;;  %p916_p4 = scmp.ge.s32.totalorder %s1108_s23, 2 }
   0x6   : > { %s1183_s28 = scalar_select %p85_p0, %s1104_s22, %s87_s27  }
   0x7   : > { %p96_p3 = por %p95_p2, %p94_p1  ;;  %200 = sbr.rel (%p916_p4) target bundleno = 28 (0x1c), region = 32 }
   0xe   : > { %203 = sbr.rel (!%p96_p3) target bundleno = 28 (0x1c), region = 36  ;;  %s205_s29 = sand.u32 (%p96_p3), 1, %s1104_s22  }
   0xf   : > { %s918_s30 = sshll.u32 (%p96_p3), %s1108_s23, 2  ;;  %s917_s7 = sshll.u32 (%p96_p3), %s205_s29, 6 }
  0x10   : > { %s1191_s10 = scalar_lea.vmem (%p96_p3), %s1374_s3, %s918_s30  ;;  %s207_s11 = scalar_lea.vmem (%p96_p3), [#allocation7], %s917_s7 }
  0x11   : > { %v225_v0 = vld [vmem:[%s1191_s10] sm:$0xf] (%p96_p3)  ;;  %v227_v1 = vld [vmem:[%s1191_s10 + $0x8] sm:$0xf] (%p96_p3)  ;;  %v229_v2 = vld [vmem:[%s1191_s10 + $0x10] sm:$0xf] (%p96_p3) }
  0x12   : > { %226 = vst [vmem:[%s207_s11] sm:$0xf] (%p96_p3), %v225_v0  ;;  %228 = vst [vmem:[%s207_s11 + $0x4] sm:$0xf] (%p96_p3), %v227_v1  ;;  %v231_v3 = vld [vmem:[%s1191_s10 + $0x18] sm:$0xf] (%p96_p3) }
  0x13   : > { %v233_v4 = vld [vmem:[%s1191_s10 + $0x20] sm:$0xf] (%p96_p3)  ;;  %230 = vst [vmem:[%s207_s11 + $0x8] sm:$0xf] (%p96_p3), %v229_v2  ;;  %232 = vst [vmem:[%s207_s11 + $0xc] sm:$0xf] (%p96_p3), %v231_v3 }
  0x14   : > { %234 = vst [vmem:[%s207_s11 + $0x10] sm:$0xf] (%p96_p3), %v233_v4  ;;  %v235_v5 = vld [vmem:[%s1191_s10 + $0x28] sm:$0xf] (%p96_p3)  ;;  %v237_v6 = vld [vmem:[%s1191_s10 + $0x30] sm:$0xf] (%p96_p3) }
  0x15   : > { %v239_v7 = vld [vmem:[%s1191_s10 + $0x38] sm:$0xf]  ;;  %236 = vst [vmem:[%s207_s11 + $0x14] sm:$0xf] %v235_v5  ;;  %238 = vst [vmem:[%s207_s11 + $0x18] sm:$0xf] %v237_v6 }
  0x16   : > { %240 = vst [vmem:[%s207_s11 + $0x1c] sm:$0xf] %v239_v7  ;;  %v241_v8 = vld [vmem:[%s1191_s10 + $0x40] sm:$0xf]  ;;  %v243_v9 = vld [vmem:[%s1191_s10 + $0x48] sm:$0xf] }
  0x17   : > { %v245_v10 = vld [vmem:[%s1191_s10 + $0x50] sm:$0xf]  ;;  %242 = vst [vmem:[%s207_s11 + $0x20] sm:$0xf] %v241_v8  ;;  %244 = vst [vmem:[%s207_s11 + $0x24] sm:$0xf] %v243_v9 }
  0x18   : > { %246 = vst [vmem:[%s207_s11 + $0x28] sm:$0xf] %v245_v10  ;;  %v247_v11 = vld [vmem:[%s1191_s10 + $0x58] sm:$0xf]  ;;  %v249_v12 = vld [vmem:[%s1191_s10 + $0x60] sm:$0xf] }
  0x19   : > { %v251_v13 = vld [vmem:[%s1191_s10 + $0x68] sm:$0xf]  ;;  %248 = vst [vmem:[%s207_s11 + $0x2c] sm:$0xf] %v247_v11  ;;  %250 = vst [vmem:[%s207_s11 + $0x30] sm:$0xf] %v249_v12 }
  0x1a   : > { %252 = vst [vmem:[%s207_s11 + $0x34] sm:$0xf] %v251_v13  ;;  %v253_v14 = vld [vmem:[%s1191_s10 + $0x70] sm:$0xf]  ;;  %v255_v15 = vld [vmem:[%s1191_s10 + $0x78] sm:$0xf] }
  0x1b   : > { %254 = vst [vmem:[%s207_s11 + $0x38] sm:$0xf] %v253_v14  ;;  %256 = vst [vmem:[%s207_s11 + $0x3c] sm:$0xf] %v255_v15 }
  0x1c PF: > { %p919_p5 = scmp.ge.s32.totalorder %s1108_s23, 1  ;;  %p316_p6 = scmp.lt.s32.totalorder %s1108_s23, 3 }
  0x1e   : > { %p317_p7 = pnand %p919_p5, %p316_p6 }
  0x1f   : > { %s323_s12 = sand.u32 (!%p317_p7), 1, %s1100_s21   ;;  %p350_p8 = scmp.lt.s32.totalorder (!%p317_p7), %s1171_s24, 1 }
  0x20   : > { %320 = sbr.rel (%p317_p7) target bundleno = 1450 (0x5aa), region = 81  ;;  %s920_s13 = sshll.u32 (!%p317_p7), %s323_s12, 6 }
  0x21   : > { %s1220_s18 = scalar_lea.vmem (!%p317_p7), [#allocation7], %s920_s13  ;;  %p921_p9 = scmp.ne.s32.totalorder (!%p317_p7), %s1171_s24, 0 }
  0x27   : > { %s1214_s14 = scalar_select %p350_p8, %s1171_s24, 1 }
  0x28   : > { %357 = sbr.rel (%p921_p9) target bundleno = 47 (0x2f), region = 89  ;;  %vm358_vm0 = vcmask (!%p921_p9), 7168   ;;  %v1110_v16 = vmov (!%p921_p9), -1e+30   ;;  %v1111_v17 = vmov (!%p921_p9), 0.0   ;;  %v1112_v18 = vmov (!%p921_p9), 0  }
  0x29   : > { %s352_s17 = scalar_lea.vmem %s1375_s4, %s1214_s14  ;;  %359 = vst.msk [vmem:[#allocation2] sm:$0xff] (!%p921_p9), %vm358_vm0, %v1110_v16  ;;  %360 = vst.msk [vmem:[#allocation2 + $0x8] sm:$0xff] (!%p921_p9), %vm358_vm0, %v1110_v16 }
  0x2a   : > { %365 = vst.msk [vmem:[#allocation5] sm:$0xff] (!%p921_p9), %vm358_vm0, %v1110_v16  ;;  %366 = vst.msk [vmem:[#allocation5 + $0x8] sm:$0xff] (!%p921_p9), %vm358_vm0, %v1110_v16 }
  0x2b   : > { %361 = vst.msk [vmem:[#allocation3] sm:$0xff] (!%p921_p9), %vm358_vm0, %v1111_v17  ;;  %362 = vst.msk [vmem:[#allocation3 + $0x8] sm:$0xff] (!%p921_p9), %vm358_vm0, %v1111_v17 }
  0x2c   : > { %363 = vst.msk [vmem:[#allocation4] sm:$0xff] (!%p921_p9), %vm358_vm0, %v1111_v17  ;;  %364 = vst.msk [vmem:[#allocation4 + $0x8] sm:$0xff] (!%p921_p9), %vm358_vm0, %v1111_v17 }
  0x2d   : > { %367 = vst.msk [vmem:[#allocation6] sm:$0xff] (!%p921_p9), %vm358_vm0, %v1112_v18  ;;  %368 = vst.msk [vmem:[#allocation6 + $0x8] sm:$0xff] (!%p921_p9), %vm358_vm0, %v1112_v18 }
  0x2f PF: > { %v1039_v19 = vld [vmem:[%s1220_s18] sm:$0xff]   ;;  %v1113_v20 = vmov 0.0   ;;  %v1040_v21 = vld [vmem:[%s1220_s18 + $0x8] sm:$0xff]   ;;  %vm1114_vm1 = vmmov 0   ;;  %v1041_v22 = vld [vmem:[%s1220_s18 + $0x10] sm:$0xff]   ;;  %v1115_v36 = vmov 0   ;;  %v490_v37 = vlaneseq }
  0x30   : > { %955 = vmatprep.subr.bf16.mxu0 %v1113_v20  ;;  %971 = vmatprep.mubr.msk.bf16.mxu0 %vm1114_vm1, %v1113_v20  ;;  %v1042_v23 = vld [vmem:[%s1220_s18 + $0x18] sm:$0xff]   ;;  %v1043_v24 = vld [vmem:[%s1220_s18 + $0x20] sm:$0xff]   ;;  %v1044_v25 = vld [vmem:[%s1220_s18 + $0x28] sm:$0xff]   ;;  %s932_s26 = sshll.u32 %s1171_s24, 7  ;;  %vm536_vm2 = vcmask 7168   ;;  %vm1117_vm11 = vmmov (!%p921_p9), 0  }
  0x31   : > { %956 = vmatpush3.bf16.msra.mxu0 %v1039_v19  ;;  %v1045_v26 = vld [vmem:[%s1220_s18 + $0x30] sm:$0xff]   ;;  %v1046_v27 = vld [vmem:[%s1220_s18 + $0x38] sm:$0xff]   ;;  %1037 = vset.pattern.permute.xlu1 %v1115_v36  ;;  %v1249_v38 = vand.u32 127, %v490_v37  ;;  %v492_v39 = vstv %s932_s26  ;;  %v1251_v40 = vld [vmem:[#allocation5] sm:$0xff]  ;;  %vm699_vm13 = vcmask (!%p921_p9), 64512  }
  0x32   : > { %957 = vmatprep.subr.bf16.mxu0 %v1113_v20  ;;  %v1047_v28 = vld [vmem:[%s1373_s2] sm:$0xff]   ;;  %1038 = vset.pattern.permute.xlu0 %v1115_v36  ;;  %v1271_v46 = vld [vmem:[#allocation5 + $0x8] sm:$0xff]  ;;  %v501_v48 = vld [vmem:[#allocation2 + $0x8] sm:$0xff] }
  0x33   : > { %v922_v29 = vld [vmem:[%s352_s17] ss:$0 sm:$0xff]  ;;  %v1256_v42 = vadd.s32 %v492_v39, %v1249_v38  ;;  %v1301_v60 = vld [vmem:[%s1376_s5 + $0x8] sm:$0xff] }
  0x34   : > { %v1253_v41 = vld [vmem:[#allocation2] sm:$0xff] }
  0x35   : > { %958 = vmatpush3.bf16.msra.mxu0 %v1040_v21  ;;  %v1292_v56 = vld [vmem:[%s1376_s5] sm:$0xff] }
  0x36   : > { %959 = vmatprep.subr.bf16.mxu0 %v1113_v20 }
  0x39   : > { %960 = vmatpush3.bf16.msra.mxu0 %v1041_v22 }
  0x3a   : > { %961 = vmatprep.subr.bf16.mxu0 %v1113_v20 }
  0x3d   : > { %962 = vmatpush3.bf16.msra.mxu0 %v1042_v23 }
  0x3e   : > { %963 = vmatprep.subr.bf16.mxu0 %v1113_v20 }
  0x41   : > { %964 = vmatpush3.bf16.msra.mxu0 %v1043_v24  ;;  %v505_v24 = vld [vmem:[#allocation3 + $0x8] sm:$0xff] }
  0x42   : > { %965 = vmatprep.subr.bf16.mxu0 %v1113_v20 }
  0x45   : > { %966 = vmatpush3.bf16.msra.mxu0 %v1044_v25 }
  0x46   : > { %967 = vmatprep.subr.bf16.mxu0 %v1113_v20 }
  0x49   : > { %968 = vmatpush3.bf16.msra.mxu0 %v1045_v26 }
  0x4a   : > { %969 = vmatprep.subr.bf16.mxu0 %v1113_v20  ;;  %v504_v20 = vld [vmem:[#allocation3] sm:$0xff] }
  0x4d   : > { %970 = vmatpush3.bf16.msra.mxu0 %v1046_v27 }
  0x50   : > { %972 = vmatmul.mubr.bf16.vlgmr.msra.gmra.mrb[0].mxu0 %v1047_v28 }
 0x123   : > { %v482_v30 = vpop.f32.mrb[0].mxu0 }
 0x124   : > { %v1241_v31 = vadd.f32 %v922_v29, %v482_v30  ;;  %v973_v32 = vpop.f32.mrb[1].mxu0 }
 0x125   : > { %v485_v33 = vpop.f32.mrb[2].mxu0 }
 0x126   : > { %496 = vmax.xlane.f32.xlu0 %v1241_v31  ;;  %v974_v34 = vpop.f32.mrb[3].mxu0  ;;  %v1244_v35 = vadd.f32 %v922_v29, %v485_v33  ;;  %v597_v33 = vld [vmem:[#allocation6] sm:$0xff] }
 0x12a   : > { %498 = vmax.xlane.f32.xlu0 %v1244_v35 }
 0x1b3   : > { %v1258_v43 = vpop.xlane.xlu0 %496 }
 0x1b4   : > { %vm595_vm3 = vcmp.gt.f32.partialorder %v1258_v43, %v1251_v40  ;;  %v502_v44 = vmax.f32 %v1253_v41, %v1258_v43  ;;  %vm561_vm4 = vcmp.eq.f32.partialorder %v1241_v31, %v1258_v43 }
 0x1b5   : > { %v605_v45 = vsel %vm595_vm3, %v1258_v43, %v1251_v40  ;;  %v563_v47 = vsel %vm561_vm4, %v1256_v42, 1073741824  ;;  %v613_v43 = vld [vmem:[%s1372_s1] sm:$0xf] (!%p921_p9) }
 0x1b6   : > { %607 = vst.msk [vmem:[#allocation5] sm:$0xff] %vm536_vm2, %v605_v45  ;;  %516 = vperm.xlu1 %1037, %v502_v44   ;;  %v506_v49 = vsub.f32 %v1253_v41, %v502_v44  ;;  %539 = vst.msk [vmem:[#allocation2] sm:$0xff] %vm536_vm2, %v502_v44  ;;  %v566_v50 = vshra.s32 %v563_v47, 16  ;;  %v565_v4 = vand.u32 65535, %v563_v47 }
 0x1b7   : > { %v1277_v51 = vpop.xlane.xlu0 %498 }
 0x1b8   : > { %vm596_vm5 = vcmp.gt.f32.partialorder %v1277_v51, %v1271_v46  ;;  %v568_v52 = vcvt.s32.f32 %v566_v50  ;;  %v503_v53 = vmax.f32 %v501_v48, %v1277_v51  ;;  %vm562_vm6 = vcmp.eq.f32.partialorder %v1244_v35, %v1277_v51 }
 0x1b9   : > { %v606_v54 = vsel %vm596_vm5, %v1277_v51, %v1271_v46  ;;  %v564_v57 = vsel %vm562_vm6, %v1256_v42, 1073741824  ;;  %v567_v7 = vcvt.s32.f32 %v565_v4  ;;  %v508_v17 = vmul.f32 1.442695, %v506_v49  ;;  %v542_v49 = vld [vmem:[#allocation4 + $0x8] sm:$0xff] }
 0x1ba   : > { %608 = vst.msk [vmem:[#allocation5 + $0x8] sm:$0xff] %vm536_vm2, %v606_v54  ;;  %569 = vmin.xlane.f32.xlu0 %v568_v52  ;;  %521 = vperm.xlu1 %1037, %v503_v53   ;;  %v507_v55 = vsub.f32 %v501_v48, %v503_v53  ;;  %540 = vst.msk [vmem:[#allocation2 + $0x8] sm:$0xff] %vm536_vm2, %v503_v53  ;;  %v580_v58 = vshra.s32 %v564_v57, 16  ;;  %v579_v11 = vand.u32 65535, %v564_v57  ;;  %v598_v48 = vld [vmem:[#allocation6 + $0x8] sm:$0xff]  ;;  %v695_v46 = vshrl.u32 (!%p921_p9), %v490_v37, 7 }
 0x1bb   : > { %v612_v54 = vld [vmem:[%s1371_s0] sm:$0xf] (!%p921_p9) }
 0x1bc   : > { %v582_v59 = vcvt.s32.f32 %v580_v58  ;;  %v581_v13 = vcvt.s32.f32 %v579_v11  ;;  %v510_v18 = vmul.f32 1.442695, %v507_v55  ;;  %v1116_v55 = vmov (!%p921_p9), 0.0  }
 0x1bd   : > { %975 = vmatprep.subr.bf16.mxu0 (!%p921_p9), %v1116_v55  ;;  %981 = vmatprep.subr.bf16.mxu1 (!%p921_p9), %v1116_v55  ;;  %vm696_vm12 = vcmp.eq.s32.totalorder (!%p921_p9), %v695_v46, %v1249_v38 }
 0x1be   : > { %976 = vmatpush3.bf16.xpose.msra.mxu0 (!%p921_p9), %v613_v43  ;;  %982 = vmatpush3.bf16.xpose.msra.mxu1 (!%p921_p9), %v612_v54  ;;  %v934_v58 = vsel (!%p921_p9), %vm696_vm12, 1.0, %v1116_v55 }
 0x1bf   : > { %977 = vmatprep.mubr.msk.bf16.mxu0 (!%p921_p9), %vm1117_vm11, %v1116_v55  ;;  %983 = vmatprep.mubr.msk.bf16.mxu1 (!%p921_p9), %vm1117_vm11, %v1116_v55 }
 0x1c5   : > { %978 = vmatmul.mubr.bf16.vlgmr.msra.gmra.mrb[0].mxu0 (!%p921_p9), %v612_v54  ;;  %984 = vmatmul.mubr.bf16.vlgmr.msra.gmra.mrb[0].mxu1 (!%p921_p9), %v613_v43 }
 0x1d0   : > { %544 = vperm.xlu0 %1038, %v1292_v56  }
 0x1de   : > { %583 = vmin.xlane.f32.xlu1 %v582_v59 }
 0x1ef   : > { %547 = vperm.xlu1 %1037, %v1301_v60  }
 0x235   : > { %v517_v61 = vpop.permute.xlu1 %516 }
 0x236   : > { %v524_v62 = vsub.f32 %v1241_v31, %v517_v61 }
 0x238   : > { %v526_v63 = vmul.f32 1.442695, %v524_v62 }
 0x239   : > { %v522_v0 = vpop.permute.xlu1 %521 }
 0x23a   : > { %1048 = vpow2.f32 %v526_v63  ;;  %v525_v1 = vsub.f32 %v1244_v35, %v522_v0 }
 0x23c   : > { %v528_v2 = vmul.f32 1.442695, %v525_v1 }
 0x23e   : > { %1050 = vpow2.f32 %v528_v2 }
 0x23f   : > { %1052 = vpow2.f32 %v508_v17 }
 0x240   : > { %1054 = vpow2.f32 %v510_v18 }
 0x244   : > { %v1049_v3 = vpop.eup %1048 }
 0x245   : > { %530 = vadd.xlane.f32.xlu0 %v1049_v3 }
 0x247   : > { %v570_v5 = vpop.xlane.xlu0 %569 }
 0x248   : > { %v1051_v6 = vpop.eup %1050  ;;  %vm571_vm7 = vcmp.eq.f32.partialorder %v568_v52, %v570_v5  ;;  %v576_v28 = vcvt.f32.s32 %v570_v5 }
 0x249   : > { %532 = vadd.xlane.f32.xlu0 %v1051_v6  ;;  %v572_v8 = vsel %vm571_vm7, %v567_v7, inf  ;;  %v1053_v19 = vpop.eup %1052 }
 0x24a   : > { %v512_v21 = vmul.f32 %v1053_v19, %v504_v20  ;;  %v1055_v22 = vpop.eup %1054 }
 0x24b   : > { %v513_v26 = vmul.f32 %v1055_v22, %v505_v24 }
 0x24d   : > { %573 = vmin.xlane.f32.xlu0 %v572_v8 }
 0x24f   : > { %v545_v9 = vpop.permute.xlu0 %544 }
 0x250   : > { %vm549_vm8 = vcmp.eq.s32.totalorder %v1256_v42, %v545_v9 }
 0x251   : > { %v551_v10 = vsel %vm549_vm8, %v1241_v31, 0.0  ;;  %v577_v31 = vshll.u32 %v576_v28, 16 }
 0x252   : > { %553 = vadd.xlane.f32.xlu0 %v551_v10 }
 0x26b   : > { %v584_v12 = vpop.xlane.xlu1 %583 }
 0x26c   : > { %vm585_vm9 = vcmp.eq.f32.partialorder %v582_v59, %v584_v12 }
 0x26d   : > { %v586_v14 = vsel %vm585_vm9, %v581_v13, inf }
 0x26e   : > { %587 = vmin.xlane.f32.xlu1 %v586_v14 }
 0x26f   : > { %v548_v15 = vpop.permute.xlu1 %547 }
 0x270   : > { %vm550_vm10 = vcmp.eq.s32.totalorder %v1256_v42, %v548_v15  ;;  %v590_v42 = vcvt.f32.s32 %v584_v12 }
 0x271   : > { %v552_v16 = vsel %vm550_vm10, %v1244_v35, 0.0  ;;  %v541_v35 = vld [vmem:[#allocation4] sm:$0xff] }
 0x272   : > { %555 = vadd.xlane.f32.xlu1 %v552_v16  ;;  %v591_v45 = vshll.u32 %v590_v42, 16 }
 0x298   : > { %v648_v51 = vpop.f32.mrb[0].mxu0 (!%p921_p9)  ;;  %v688_v57 = vpop.f32.mrb[0].mxu1 (!%p921_p9) }
 0x299   : > { %v979_v59 = vpop.f32.mrb[1].mxu0 (!%p921_p9)  ;;  %v985_v61 = vpop.f32.mrb[1].mxu1 (!%p921_p9)  ;;  %v700_v62 = vsel (!%p921_p9), %vm699_vm13, %v648_v51, -inf  ;;  %v742_v63 = vmul.f32 (!%p921_p9), %v934_v58, %v688_v57  ;;  %v730_v4 = vsel (!%p921_p9), %vm699_vm13, %v688_v57, -inf  ;;  %v712_v5 = vmul.f32 (!%p921_p9), %v934_v58, %v648_v51 }
 0x29a   : > { %701 = vmax.xlane.f32.xlu0 (!%p921_p9), %v700_v62  ;;  %v651_v0 = vpop.f32.mrb[2].mxu0 (!%p921_p9)  ;;  %v691_v1 = vpop.f32.mrb[2].mxu1 (!%p921_p9) }
 0x29b   : > { %v980_v2 = vpop.f32.mrb[3].mxu0 (!%p921_p9)  ;;  %v986_v3 = vpop.f32.mrb[3].mxu1 (!%p921_p9)  ;;  %v713_v37 = vsel (!%p921_p9), %vm699_vm13, %v712_v5, 0.0  ;;  %v743_v15 = vsel (!%p921_p9), %vm699_vm13, %v742_v63, 0.0 }
 0x29e   : > { %731 = vmax.xlane.f32.xlu0 (!%p921_p9), %v730_v4 }
 0x2a2   : > { %714 = vadd.xlane.f32.xlu0 (!%p921_p9), %v713_v37 }
 0x2d2   : > { %v531_v23 = vpop.xlane.xlu0 %530 }
 0x2d3   : > { %v534_v25 = vadd.f32 %v531_v23, %v512_v21 }
 0x2d5   : > { %537 = vst.msk [vmem:[#allocation3] sm:$0xff] %vm536_vm2, %v534_v25 }
 0x2d6   : > { %v533_v27 = vpop.xlane.xlu0 %532 }
 0x2d7   : > { %v535_v29 = vadd.f32 %v533_v27, %v513_v26 }
 0x2d9   : > { %538 = vst.msk [vmem:[#allocation3 + $0x8] sm:$0xff] %vm536_vm2, %v535_v29 }
 0x2da   : > { %v574_v30 = vpop.xlane.xlu0 %573 }
 0x2db   : > { %v575_v32 = vcvt.f32.s32 %v574_v30 }
 0x2dd   : > { %v578_v34 = vadd.s32 %v577_v31, %v575_v32 }
 0x2df   : > { %v599_v36 = vsel %vm595_vm3, %v578_v34, %v597_v33  ;;  %v554_v39 = vpop.xlane.xlu0 %553 }
 0x2e0   : > { %601 = vst.msk [vmem:[#allocation6] sm:$0xff] %vm536_vm2, %v599_v36  ;;  %v557_v41 = vadd.f32 %v554_v39, %v541_v35 }
 0x2e2   : > { %559 = vst.msk [vmem:[#allocation4] sm:$0xff] %vm536_vm2, %v557_v41 }
 0x2fb   : > { %v588_v44 = vpop.xlane.xlu1 %587 }
 0x2fc   : > { %v589_v47 = vcvt.f32.s32 %v588_v44  ;;  %611 = sbr.rel (%p921_p9) target bundleno = 1199 (0x4af), region = 93 }
 0x2fe   : > { %v592_v50 = vadd.s32 %v591_v45, %v589_v47 }
 0x2ff   : > { %v556_v52 = vpop.xlane.xlu1 %555 }
 0x300   : > { %v600_v53 = vsel %vm596_vm5, %v592_v50, %v598_v48  ;;  %v558_v40 = vadd.f32 %v556_v52, %v542_v49 }
 0x301   : > { %602 = vst.msk [vmem:[#allocation6 + $0x8] sm:$0xff] %vm536_vm2, %v600_v53 }
 0x302   : > { %560 = vst.msk [vmem:[#allocation4 + $0x8] sm:$0xff] %vm536_vm2, %v558_v40 }
 0x327   : > { %v702_v38 = vpop.xlane.xlu0 %701 }
 0x328   : > { %v703_v6 = vsub.f32 %v648_v51, %v702_v38 }
 0x32a   : > { %v704_v7 = vmul.f32 1.442695, %v703_v6 }
 0x32b   : > { %v732_v8 = vpop.xlane.xlu0 %731 }
 0x32c   : > { %1056 = vpow2.f32 %v704_v7  ;;  %v733_v9 = vsub.f32 %v688_v57, %v732_v8 }
 0x32e   : > { %v734_v10 = vmul.f32 1.442695, %v733_v9 }
 0x32f   : > { %v715_v22 = vpop.xlane.xlu0 %714 }
 0x330   : > { %1058 = vpow2.f32 %v734_v10 }
 0x336   : > { %v1057_v11 = vpop.eup %1056 }
 0x337   : > { %v706_v12 = vsel %vm699_vm13, %v1057_v11, 0.0 }
 0x338   : > { %707 = vadd.xlane.f32.xlu1 %v706_v12 }
 0x33a   : > { %v1059_v13 = vpop.eup %1058 }
 0x33b   : > { %v736_v14 = vsel %vm699_vm13, %v1059_v13, 0.0 }
 0x33c   : > { %737 = vadd.xlane.f32.xlu1 %v736_v14 }
 0x340   : > { %744 = vadd.xlane.f32.xlu1 %v743_v15 }
 0x3c5   : > { %v708_v16 = vpop.xlane.xlu1 %707 }
 0x3c6   : > { %1060 = vlog2.f32 %v708_v16 }
 0x3c9   : > { %v738_v17 = vpop.xlane.xlu1 %737 }
 0x3ca   : > { %1062 = vlog2.f32 %v738_v17 }
 0x3cd   : > { %v745_v27 = vpop.xlane.xlu1 %744 }
 0x3d0   : > { %v1061_v18 = vpop.eup %1060 }
 0x3d1   : > { %v710_v19 = vmul.f32 0.6931472, %v1061_v18 }
 0x3d3   : > { %v711_v20 = vadd.f32 %v710_v19, %v702_v38 }
 0x3d4   : > { %v1063_v21 = vpop.eup %1062 }
 0x3d5   : > { %v740_v23 = vmul.f32 0.6931472, %v1063_v21  ;;  %v716_v24 = vsub.f32 %v711_v20, %v715_v22 }
 0x3d7   : > { %v741_v25 = vadd.f32 %v740_v23, %v732_v8  ;;  %v717_v26 = vsel %vm536_vm2, %v716_v24, 0.0 }
 0x3d8   : > { %718 = vadd.xlane.f32.xlu0 %v717_v26 }
 0x3d9   : > { %v746_v28 = vsub.f32 %v741_v25, %v745_v27 }
 0x3db   : > { %v747_v29 = vsel %vm536_vm2, %v746_v28, 0.0 }
 0x3dc   : > { %748 = vadd.xlane.f32.xlu1 %v747_v29 }
 0x465   : > { %v719_v30 = vpop.xlane.xlu0 %718 }
 0x466   : > { %v720_v31 = vrot.slane %v719_v30, 4 }
 0x468   : > { %v721_v32 = vadd.f32 %v720_v31, %v719_v30 }
 0x469   : > { %v749_v33 = vpop.xlane.xlu1 %748 }
 0x46a   : > { %v722_v34 = vrot.slane %v721_v32, 2  ;;  %v750_v35 = vrot.slane %v749_v33, 4 }
 0x46c   : > { %v751_v36 = vadd.f32 %v750_v35, %v749_v33  ;;  %v723_v39 = vadd.f32 %v722_v34, %v721_v32 }
 0x46e   : > { %v752_v41 = vrot.slane %v751_v36, 2  ;;  %v724_v42 = vrot.slane %v723_v39, 1 }
 0x470   : > { %v753_v44 = vadd.f32 %v752_v41, %v751_v36  ;;  %v725_v45 = vadd.f32 %v724_v42, %v723_v39 }
 0x472   : > { %987 = vpush %v725_v45  ;;  %v754_v47 = vrot.slane %v753_v44, 1 }
 0x474   : > { %v755_v48 = vadd.f32 %v754_v47, %v753_v44 }
 0x476   : > { %989 = vpush %v755_v48 }
 0x4a3   : > { %s988_s12 = spop %987 }
 0x4a4   : > { %s729_s13 = smul.f32 0.125, %s988_s12 }
 0x4a7   : > { %s990_s14 = spop %989 }
 0x4a8   : > { %s759_s15 = smul.f32 0.125, %s990_s14 }
 0x4aa   : > { %s760_s16 = sadd.f32 %s759_s15, %s729_s13 }
 0x4ac   : > { %s761_s17 = smul.f32 0.5, %s760_s16 }
 0x4ae   : > { %763 = sst [smem:[#allocation8]] %s761_s17 }
 0x4af PF: > { %p935_p10 = scmp.ne.s32.totalorder %s1171_s24, 1 }
 0x4b0   : > { %v799_v49 = vld [vmem:[#allocation6] sm:$0xff] (!%p935_p10)  ;;  %v770_v52 = vld [vmem:[#allocation3] sm:$0xff] (!%p935_p10)  ;;  %v771_v53 = vld [vmem:[#allocation3 + $0x8] sm:$0xff] (!%p935_p10)  ;;  %v1118_v40 = vmov (!%p935_p10), 0.0  }
 0x4b1   : > { %767 = sbr.rel (%p935_p10) target bundleno = 1434 (0x59a), region = 97  ;;  %vm801_vm14 = vcmp.eq.s32.totalorder (!%p935_p10), %v799_v49, %v1292_v56  ;;  %1064 = vlog2.f32 (!%p935_p10), %v770_v52  ;;  %v768_v59 = vld [vmem:[#allocation2] sm:$0xff] (!%p935_p10)  ;;  %v769_v56 = vld [vmem:[#allocation2 + $0x8] sm:$0xff] (!%p935_p10) }
 0x4b2   : > { %v936_v43 = vsel (!%p935_p10), %vm801_vm14, 1.0, %v1118_v40  ;;  %1066 = vlog2.f32 (!%p935_p10), %v771_v53  ;;  %v778_v63 = vld [vmem:[#allocation4] sm:$0xff] (!%p935_p10) }
 0x4b3   : > { %v835_v55 = vmul.f32 (!%p935_p10), 0.0, %v936_v43  ;;  %v818_v6 = vsel (!%p935_p10), %vm536_vm2, %v936_v43, 0.0 }
 0x4b4   : > { %v800_v50 = vld [vmem:[#allocation6 + $0x8] sm:$0xff] (!%p935_p10) }
 0x4b5   : > { %vm802_vm15 = vcmp.eq.s32.totalorder (!%p935_p10), %v800_v50, %v1301_v60  ;;  %v837_v51 = vsel (!%p935_p10), %vm536_vm2, %v835_v55, 0.0  ;;  %v779_v1 = vld [vmem:[#allocation4 + $0x8] sm:$0xff] (!%p935_p10) }
 0x4b6   : > { %v937_v54 = vsel (!%p935_p10), %vm802_vm15, 1.0, %v1118_v40 }
 0x4b7   : > { %v838_v46 = vsel (!%p935_p10), %vm536_vm2, %v937_v54, 0.0  ;;  %v817_v3 = vmul.f32 (!%p935_p10), 0.0, %v937_v54 }
 0x4b8   : > { %v839_v57 = vadd.f32 %v838_v46, %v837_v51 }
 0x4b9   : > { %v819_v7 = vsel %vm536_vm2, %v817_v3, 0.0 }
 0x4ba   : > { %840 = vadd.xlane.f32.xlu1 %v839_v57  ;;  %v820_v9 = vadd.f32 %v819_v7, %v818_v6 }
 0x4bb   : > { %v1065_v58 = vpop.eup %1064 }
 0x4bc   : > { %v1067_v61 = vpop.eup %1066  ;;  %v773_v62 = vmul.f32 0.6931472, %v1065_v58 }
 0x4bd   : > { %v775_v60 = vmul.f32 0.6931472, %v1067_v61 }
 0x4be   : > { %v776_v0 = vadd.f32 %v773_v62, %v768_v59 }
 0x4bf   : > { %v777_v2 = vadd.f32 %v775_v60, %v769_v56 }
 0x4c0   : > { %v780_v4 = vsub.f32 %v776_v0, %v778_v63 }
 0x4c1   : > { %v781_v5 = vsub.f32 %v777_v2, %v779_v1 }
 0x4c2   : > { %v782_v37 = vsel %vm536_vm2, %v780_v4, 0.0 }
 0x4c3   : > { %v783_v38 = vsel %vm536_vm2, %v781_v5, 0.0 }
 0x4c4   : > { %v784_v8 = vadd.f32 %v783_v38, %v782_v37 }
 0x4c6   : > { %785 = vadd.xlane.f32.xlu0 %v784_v8 }
 0x4ca   : > { %821 = vadd.xlane.f32.xlu0 %v820_v9 }
 0x547   : > { %v841_v10 = vpop.xlane.xlu1 %840 }
 0x548   : > { %v842_v11 = vrot.slane %v841_v10, 4 }
 0x54a   : > { %v843_v12 = vadd.f32 %v842_v11, %v841_v10 }
 0x54c   : > { %v844_v16 = vrot.slane %v843_v12, 2 }
 0x54e   : > { %v845_v22 = vadd.f32 %v844_v16, %v843_v12 }
 0x550   : > { %v846_v27 = vrot.slane %v845_v22, 1 }
 0x552   : > { %v847_v30 = vadd.f32 %v846_v27, %v845_v22 }
 0x553   : > { %v786_v13 = vpop.xlane.xlu0 %785 }
 0x554   : > { %v787_v14 = vrot.slane %v786_v13, 4 }
 0x556   : > { %v788_v15 = vadd.f32 %v787_v14, %v786_v13 }
 0x557   : > { %v822_v17 = vpop.xlane.xlu0 %821 }
 0x558   : > { %v789_v18 = vrot.slane %v788_v15, 2  ;;  %v823_v19 = vrot.slane %v822_v17, 4 }
 0x55a   : > { %v824_v20 = vadd.f32 %v823_v19, %v822_v17  ;;  %v790_v21 = vadd.f32 %v789_v18, %v788_v15 }
 0x55c   : > { %v825_v23 = vrot.slane %v824_v20, 2  ;;  %v791_v24 = vrot.slane %v790_v21, 1 }
 0x55e   : > { %v826_v25 = vadd.f32 %v825_v23, %v824_v20  ;;  %v792_v26 = vadd.f32 %v791_v24, %v790_v21 }
 0x560   : > { %991 = vpush %v792_v26  ;;  %v827_v28 = vrot.slane %v826_v25, 1 }
 0x562   : > { %v828_v29 = vadd.f32 %v827_v28, %v826_v25 }
 0x564   : > { %993 = vpush %v828_v29 }
 0x565   : > { %995 = vpush %v847_v30 }
 0x591   : > { %s992_s18 = spop %991 }
 0x592   : > { %s796_s19 = smul.f32 0.0625, %s992_s18 }
 0x594   : > { %798 = sst [smem:[#allocation8 + $0x1]] %s796_s19 }
 0x595   : > { %s994_s20 = spop %993 }
 0x596   : > { %s830_s21 = smul.f32 0.125, %s994_s20  ;;  %s996_s23 = spop %995 }
 0x597   : > { %s849_s26 = smul.f32 0.125, %s996_s23 }
 0x598   : > { %832 = sst [smem:[#allocation8 + $0x2]] %s830_s21 }
 0x599   : > { %851 = sst [smem:[#allocation8 + $0x3]] %s849_s26 }
 0x59a PF: > { %p1001_p11 = scmp.eq.s32.totalorder %s1171_s24, 1  ;;  %s859_s30 = sshll.u32 %s1377_s6, 4  ;;  %s860_s30 = int_to_ptr.vmem [resolvable:$true] %s859_s30 }
 0x59b   : > { %s1068_s7 = scalar_lea.vmem %s860_s30, 16  ;;  %p1075_p1 = scmp.lt.s32.totalorder %s860_s30, %s860_s30 }
 0x59c   : > { %p1069_p12 = scmp.ne.s32.totalorder %s860_s30, %s1068_s7  ;;  %p1076_p2 = scmp.lt.s32.totalorder %s1068_s7, %s1068_s7 }
 0x59e   : > { %p1070_p13 = pnand %p1069_p12, %p1001_p11  ;;  %p1077_p3 = por %p1076_p2, %p1075_p1 }
 0x5a0   : > { %p1071_p0 = pneg %p1070_p13 }
 0x5a2   : > { %p1078_p4 = pnand %p1077_p3, %p1071_p0 }
 0x5a4   : > { %1081 = shalt.err (!%p1078_p4)
}
 0x5a5   : > { %s1119_s8 = smov [#allocation8]  }
 0x5a6   : > { %998 = dma.smem_to_vmem (%p1001_p11), %s1119_s8, 16, %s860_s30, [#allocation9]  }
 0x5a7   : > { %1095 = dma.done.wait (%p1001_p11), [#allocation9], 16  }
 0x5a8   : > { %1097 = vsyncadd (%p1001_p11), [#allocation9], 4294967280 }
 0x5a9   : > { %867 = sfence }
 0x5aa PF: > { %p14_p5 = scmp.ge.s32.totalorder %s1174_s25, 4   ;;  %s1378_s21 = smov %s1104_s22 }
 0x5ab   : > { %s1379_s22 = smov %s1183_s28  ;;  %s1380_s23 = smov %s1174_s25 }
 0x5ac   :  { %16 = sbr.rel (!%p14_p5) target bundleno = 2 (0x2), region = 136 }
 0x5b3   :  { %873 = vsyncpa [#allocation9], 1 }
 0x5b4   :  { %875 = vsyncpa [#allocation9 + $0x1], 1 }

</bundles_post_ra>
